<compile_context>
chip_gen: v7x
topology: tpu7x:2x2x1
jax: 0.10.0
libtpu: 0.0.40
codegen_flags: <defaults>
</compile_context>

<pallas_src>
import numpy as np
import jax
import jax.numpy as jnp
from jax.experimental import pallas as pl
from jax.experimental.pallas import tpu as pltpu

N_TILES = 169                   # tiles per sample (13*13)
TILE_FLAT = 16                  # 4*4
FEAT_IN = N_TILES * TILE_FLAT   # 2704
FC_IN, FC_OUT = 676, 10         # 169 * 2 * 2 = 676
LANE = 128                      # padded output lanes for the large-batch path
SMALL_N_MAX = 256               # <= this: unpadded (N,10) output path
TM_MAX = 1024                   # row-tile cap (large path); ~26 MB dbl-buffered

# ---- Winograd constants (identical values to the PyTorch module) ----
_B = np.array([[1, 0, -1, 0],
               [0, 1,  1, 0],
               [0, -1, 1, 0],
               [0, 1,  0, -1]], dtype=np.float32)
_G = np.array([[1.0, 0.0, 0.0],
               [0.5, 0.5, 0.5],
               [0.5, -0.5, 0.5],
               [0.0, 0.0, 1.0]], dtype=np.float32)
_FILT = np.array([[0, -1, 0],
                  [-1, 4, -1],
                  [0, -1, 0]], dtype=np.float32)
_A = np.array([[1, 1, 1, 0],
               [0, 1, -1, -1]], dtype=np.float32)

# Host-side constant folding of the Winograd operator (row-major vec identity):
#   F = G @ filter @ G^T,  W_wino = (kron(B,B)^T * vec(F)) @ kron(A,A)^T  : (16, 4)
_F_FLAT = (_G @ _FILT @ _G.T).reshape(1, TILE_FLAT).astype(np.float32)
_K1T = np.kron(_B, _B).T.astype(np.float32)               # (16, 16)
_K2T = np.kron(_A, _A).T.astype(np.float32)               # (16, 4)
_W_WINO = ((_K1T * _F_FLAT) @ _K2T).astype(np.float32)    # (16, 4)


# -------------------- Pallas kernel --------------------
def _fused_kernel(x_ref, w_ref, b_ref, o_ref):
    # x_ref: (TM, 2704), w_ref: (2704, OUT), b_ref: (1, OUT), o_ref: (TM, OUT)
    o_ref[...] = jnp.dot(x_ref[...], w_ref[...],
                         preferred_element_type=jnp.float32) + b_ref[...]


# -------------------- one-time parameter folding (call once per weight set) ----
def fold_params(fc_w, fc_b):
    """Fold the constant Winograd operator into the FC weight.

    Returns the unpadded folded weight (2704, 10) and bias (1, 10).
    Call this ONCE when the weights change, not per forward call.
    """
    w_wino = jnp.asarray(_W_WINO)                                   # (16, 4)
    fc_w_r = fc_w.astype(jnp.float32).reshape(FC_OUT, N_TILES, 4)   # (10, 169, 4)
    # W_full[t*16 + k, o] = sum_j W_wino[k, j] * fc_w[o, t*4 + j]
    w_full = jnp.einsum('kj,otj->tko', w_wino, fc_w_r).reshape(FEAT_IN, FC_OUT)
    b_full = fc_b.astype(jnp.float32).reshape(1, FC_OUT)
    return w_full, b_full


def _round_up(v, m):
    return ((v + m - 1) // m) * m


def _pick_tm(n, cap):
    """Row tile: full block for tiny N, else >=2 grid steps (v7x dual-TC), <= cap."""
    if n <= 16:
        return n
    return min(cap, _round_up(pl.cdiv(n, 2), 8))


# -------------------- forward wrapper --------------------
def testnet_forward(x, w_fold, b_fold):
    """x: (N, 169, 4, 4); w_fold/b_fold from fold_params (already folded once)."""
    n = x.shape[0]
    xf = x.reshape(n, FEAT_IN).astype(jnp.float32)     # (N, 2704), row-major flatten

    if n <= SMALL_N_MAX:
        # Small-batch path: keep the true 10-wide output (masked store on a tiny
        # output beats inflating the weight DMA 12.8x to 128 lanes).
        out_lanes = FC_OUT
        w, b = w_fold, b_fold
        tm = _pick_tm(n, SMALL_N_MAX)
    else:
        # Large-batch path: lane-dense 128-wide output (unmasked vst), row-tiled.
        # (For repeated large-batch use, the padded weight can also be hoisted.)
        out_lanes = LANE
        w = jnp.zeros((FEAT_IN, LANE), jnp.float32).at[:, :FC_OUT].set(w_fold)
        b = jnp.zeros((1, LANE), jnp.float32).at[:, :FC_OUT].set(b_fold)
        tm = _pick_tm(n, TM_MAX)

    grid = (pl.cdiv(n, tm),)
    cost = pl.CostEstimate(
        flops=2 * n * FEAT_IN * out_lanes,
        bytes_accessed=n * FEAT_IN * 4 + FEAT_IN * out_lanes * 4 + n * out_lanes * 4,
        transcendentals=0)

    out = pl.pallas_call(
        _fused_kernel,
        grid=grid,
        out_shape=jax.ShapeDtypeStruct((n, out_lanes), jnp.float32),
        in_specs=[pl.BlockSpec((tm, FEAT_IN), lambda i: (i, 0)),        # row-tiled acts
                  pl.BlockSpec((FEAT_IN, out_lanes), lambda i: (0, 0)),  # weight resident
                  pl.BlockSpec((1, out_lanes), lambda i: (0, 0))],       # bias resident
        out_specs=pl.BlockSpec((tm, out_lanes), lambda i: (i, 0)),
        compiler_params=pltpu.CompilerParams(
            dimension_semantics=("parallel",),
            vmem_limit_bytes=40 * 1024 * 1024),
        cost_estimate=cost,
    )(xf, w, b)

    return out if out_lanes == FC_OUT else out[:, :FC_OUT]


# -------------------- pure-JAX reference (mirrors the torch op order) ----------
def reference_forward(x, fc_w, fc_b):
    B = jnp.asarray(_B)
    G = jnp.asarray(_G)
    filt = jnp.asarray(_FILT)
    A = jnp.asarray(_A)
    F = G @ filt @ G.T
    D = jnp.matmul(jnp.matmul(B, x), B.T)            # broadcasts over (N, 169)
    Y = F * D
    O = jnp.matmul(jnp.matmul(A, Y), A.T)            # (N, 169, 2, 2)
    flat = O.reshape(x.shape[0], -1)                 # (N, 676)
    return flat @ fc_w.T + fc_b


if __name__ == "__main__":
    key = jax.random.PRNGKey(0)
    kx, kw, kb = jax.random.split(key, 3)

    # batch=2; 169 tiles of 4x4 per sample (13x13 stride-2 tiles of a 28x28 image)
    x = jax.random.normal(kx, (2, N_TILES, 4, 4), dtype=jnp.float32)
    fc_w = jax.random.normal(kw, (FC_OUT, FC_IN), dtype=jnp.float32) * 0.02
    fc_b = jax.random.normal(kb, (FC_OUT,), dtype=jnp.float32) * 0.02

    # Fold the Winograd operator into the FC weight ONCE (hoisted out of forward).
    w_fold, b_fold = fold_params(fc_w, fc_b)
    w_fold, b_fold = jax.block_until_ready((w_fold, b_fold))

    fwd = jax.jit(testnet_forward)
    out = fwd(x, w_fold, b_fold)
    out = jax.block_until_ready(out)

    ref = reference_forward(x, fc_w, fc_b)
    assert out.shape == (2, FC_OUT) and out.dtype == jnp.float32
    assert jnp.allclose(out, ref, rtol=1e-3, atol=1e-3), \
        f"max abs err = {float(jnp.max(jnp.abs(out - ref)))}"
    print("KERNEL_OK")
</pallas_src>

<mosaic_0001>
module attributes {stable_mosaic.version = 11 : i64} {
  func.func @_fused_kernel(%arg0: i32, %arg1: memref<2x2704xf32, #tpu.memory_space<vmem>>, %arg2: memref<2704x10xf32, #tpu.memory_space<vmem>>, %arg3: memref<1x10xf32, #tpu.memory_space<vmem>>, %arg4: memref<2x10xf32, #tpu.memory_space<vmem>>) attributes {dimension_semantics = [#tpu.dimension_semantics<parallel>], iteration_bounds = array<i64: 1>, scalar_prefetch = 0 : i64, scratch_operands = 0 : i64, tpu.core_type = #tpu.core_type<tc>, window_params = [{transform_indices = @transform_0, window_bounds = array<i64: 2, 2704>}, {pipeline_mode = #tpu.pipeline_mode<synchronous>, transform_indices = @transform_1, window_bounds = array<i64: 2704, 10>}, {pipeline_mode = #tpu.pipeline_mode<synchronous>, transform_indices = @transform_2, window_bounds = array<i64: 1, 10>}, {transform_indices = @transform_3, window_bounds = array<i64: 2, 10>}]} {
    %c0 = arith.constant 0 : index
    %c0_0 = arith.constant 0 : index
    %0 = vector.load %arg1[%c0, %c0_0] : memref<2x2704xf32, #tpu.memory_space<vmem>>, vector<2x2704xf32>
    %c0_1 = arith.constant 0 : index
    %c0_2 = arith.constant 0 : index
    %1 = vector.load %arg2[%c0_1, %c0_2] : memref<2704x10xf32, #tpu.memory_space<vmem>>, vector<2704x10xf32>
    %cst = arith.constant dense<0.000000e+00> : vector<2x10xf32>
    %2 = tpu.matmul %0, %1, %cst {dimension_numbers = #tpu.dot_dimension_numbers<[1], [0], [0], [1], [0, 0, 1, 1], [], []>} : vector<2x2704xf32>, vector<2704x10xf32>, vector<2x10xf32> -> vector<2x10xf32>
    %c0_3 = arith.constant 0 : index
    %c0_4 = arith.constant 0 : index
    %3 = vector.load %arg3[%c0_3, %c0_4] : memref<1x10xf32, #tpu.memory_space<vmem>>, vector<1x10xf32>
    %4 = vector.broadcast %3 : vector<1x10xf32> to vector<2x10xf32>
    %5 = arith.addf %2, %4 : vector<2x10xf32>
    %c0_5 = arith.constant 0 : index
    %c0_6 = arith.constant 0 : index
    %6 = vector.load %arg4[%c0_5, %c0_6] : memref<2x10xf32, #tpu.memory_space<vmem>>, vector<2x10xf32>
    tpu.vector_store %arg4[%c0_5, %c0_6], %5 {strides = array<i32>} : memref<2x10xf32, #tpu.memory_space<vmem>>, vector<2x10xf32>,
    return
  }
  func.func @transform_0(%arg0: i32) -> (i32, i32) {
    %c0_i32 = arith.constant 0 : i32
    %c0_i32_0 = arith.constant 0 : i32
    return %arg0, %c0_i32 : i32, i32
  }
  func.func @transform_1(%arg0: i32) -> (i32, i32) {
    %c0_i32 = arith.constant 0 : i32
    %c0_i32_0 = arith.constant 0 : i32
    %c0_i32_1 = arith.constant 0 : i32
    return %c0_i32, %c0_i32_0 : i32, i32
  }
  func.func @transform_2(%arg0: i32) -> (i32, i32) {
    %c0_i32 = arith.constant 0 : i32
    %c0_i32_0 = arith.constant 0 : i32
    %c0_i32_1 = arith.constant 0 : i32
    return %c0_i32, %c0_i32_0 : i32, i32
  }
  func.func @transform_3(%arg0: i32) -> (i32, i32) {
    %c0_i32 = arith.constant 0 : i32
    %c0_i32_0 = arith.constant 0 : i32
    return %arg0, %c0_i32 : i32, i32
  }
}

</mosaic_0001>

<bundles_post_ra>
// kernel: testnet_forward.1
= control target key start
LH: loop header
LB: loop body
LE: loop exit
PB: predicated region body
PF: predicated region fallthrough
CT: control target
= control target key end

     0   :  { %v376_v3 = vlaneseq  ;;  %v2007_v8 = vmov 1983009808   ;;  %s3173_s0 = inlined_call_operand.vmem [shape: f32[2,2704], index: 0, kind: input, shape index: {}]   ;;  %s3174_s1 = inlined_call_operand.vmem [shape: f32[2704,10], index: 1, kind: input, shape index: {}]   ;;  %s3175_s2 = inlined_call_operand.vmem [shape: f32[1,10], index: 2, kind: input, shape index: {}]   ;;  %s3176_s3 = inlined_call_operand.hbm [shape: f32[2,10], index: 3, kind: output, shape index: {}]  }
   0x1   :  { %v37_v0 = vld [vmem:[%s3174_s1 + $0x80] sm:$0xff]  ;;  %v38_v1 = vld [vmem:[%s3174_s1 + $0x88] sm:$0xff]  ;;  %v39_v6 = vld [vmem:[%s3174_s1 + $0x90] sm:$0xff]  ;;  %v374_v9 = vunpack.c.l.s4 %v2007_v8 }
   0x2   :  { %v21_v2 = vld [vmem:[%s3174_s1] sm:$0xff]  ;;  %v1628_v4 = vpack.c.bf16 %v38_v1, %v37_v0  ;;  %v22_v5 = vld [vmem:[%s3174_s1 + $0x8] sm:$0xff]  ;;  %v40_v7 = vld [vmem:[%s3174_s1 + $0x98] sm:$0xff]  ;;  %v377_v17 = vshrl.u32 %v376_v3, 7 }
   0x3   :  { %v1630_v10 = vpack.c.bf16 %v22_v5, %v21_v2  ;;  %v1632_v11 = vpack.c.bf16 %v40_v7, %v39_v6  ;;  %v23_v12 = vld [vmem:[%s3174_s1 + $0x10] sm:$0xff]  ;;  %v24_v13 = vld [vmem:[%s3174_s1 + $0x18] sm:$0xff]  ;;  %v41_v14 = vld [vmem:[%s3174_s1 + $0xa0] sm:$0xff]  ;;  %v375_v16 = vunpack.c.0.s8 %v374_v9 }
   0x4   :  { %1629 = vmatprep.subr.bf16.mxu1 %v1628_v4  ;;  %v42_v15 = vld [vmem:[%s3174_s1 + $0xa8] sm:$0xff]  ;;  %v1634_v18 = vpack.c.bf16 %v24_v13, %v23_v12  ;;  %v25_v20 = vld [vmem:[%s3174_s1 + $0x20] sm:$0xff]  ;;  %v43_v22 = vld [vmem:[%s3174_s1 + $0xb0] sm:$0xff] }
   0x5   :  { %1631 = vmatpush3.bf16.msra.mxu1 %v1630_v10  ;;  %v1636_v19 = vpack.c.bf16 %v42_v15, %v41_v14  ;;  %v26_v21 = vld [vmem:[%s3174_s1 + $0x28] sm:$0xff]  ;;  %v44_v23 = vld [vmem:[%s3174_s1 + $0xb8] sm:$0xff]  ;;  %v2072_v24 = vsub.s32 %v375_v16, %v377_v17  ;;  %v27_v27 = vld [vmem:[%s3174_s1 + $0x30] sm:$0xff] }
   0x6   :  { %1633 = vmatprep.subr.bf16.mxu1 %v1632_v11  ;;  %v1638_v25 = vpack.c.bf16 %v26_v21, %v25_v20  ;;  %v1640_v26 = vpack.c.bf16 %v44_v23, %v43_v22  ;;  %v28_v28 = vld [vmem:[%s3174_s1 + $0x38] sm:$0xff]  ;;  %v45_v29 = vld [vmem:[%s3174_s1 + $0xc0] sm:$0xff]  ;;  %v46_v30 = vld [vmem:[%s3174_s1 + $0xc8] sm:$0xff] }
   0x7   :  { %v2089_v31 = vld [vmem:[%s3173_s0] sm:$0xff]  ;;  %v1642_v34 = vpack.c.bf16 %v28_v28, %v27_v27  ;;  %v30_v36 = vld [vmem:[%s3174_s1 + $0x48] sm:$0xff]  ;;  %v1644_v38 = vpack.c.bf16 %v46_v30, %v45_v29  ;;  %v47_v39 = vld [vmem:[%s3174_s1 + $0xd0] sm:$0xff] }
   0x8   :  { %v2093_v32 = vrot.slane %v2089_v31, %v2072_v24  ;;  %v101_v33 = vld [vmem:[%s3174_s1 + $0x280] sm:$0xff]  ;;  %v102_v37 = vld [vmem:[%s3174_s1 + $0x288] sm:$0xff]  ;;  %v48_v44 = vld [vmem:[%s3174_s1 + $0xd8] sm:$0xff]  ;;  %v372_v22 = vcombine.high %v2089_v31, %v2089_v31 }
   0x9   :  { %1635 = vmatpush3.bf16.msra.mxu1 %v1634_v18  ;;  %v29_v35 = vld [vmem:[%s3174_s1 + $0x40] sm:$0xff]  ;;  %v1692_v41 = vpack.c.bf16 %v102_v37, %v101_v33  ;;  %v86_v43 = vld [vmem:[%s3174_s1 + $0x208] sm:$0xff]  ;;  %v103_v46 = vld [vmem:[%s3174_s1 + $0x290] sm:$0xff]  ;;  %v1648_v54 = vpack.c.bf16 %v48_v44, %v47_v39 }
   0xa   :  { %1637 = vmatprep.subr.bf16.mxu1 %v1636_v19  ;;  %v387_v40 = vcombine.high %v2093_v32, %v2093_v32  ;;  %v85_v42 = vld [vmem:[%s3174_s1 + $0x200] sm:$0xff]  ;;  %v104_v47 = vld [vmem:[%s3174_s1 + $0x298] sm:$0xff]  ;;  %v87_v49 = vld [vmem:[%s3174_s1 + $0x210] sm:$0xff]  ;;  %v1646_v50 = vpack.c.bf16 %v30_v36, %v29_v35 }
   0xb   :  { %v1694_v45 = vpack.c.bf16 %v86_v43, %v85_v42  ;;  %1693 = vmatprep.subr.bf16.mxu0 %v1692_v41  ;;  %v1696_v48 = vpack.c.bf16 %v104_v47, %v103_v46  ;;  %v31_v51 = vld [vmem:[%s3174_s1 + $0x50] sm:$0xff]  ;;  %v32_v52 = vld [vmem:[%s3174_s1 + $0x58] sm:$0xff]  ;;  %v49_v55 = vld [vmem:[%s3174_s1 + $0xe0] sm:$0xff] }
   0xc   :  { %553 = vmatprep.mubr.f32.mxu1 %v387_v40  ;;  %v88_v53 = vld [vmem:[%s3174_s1 + $0x218] sm:$0xff]  ;;  %v105_v57 = vld [vmem:[%s3174_s1 + $0x2a0] sm:$0xff]  ;;  %v106_v58 = vld [vmem:[%s3174_s1 + $0x2a8] sm:$0xff]  ;;  %v1650_v0 = vpack.c.bf16 %v32_v52, %v31_v51  ;;  %v2238_v40 = vrot.slane %v372_v22, %v2072_v24 }
   0xd   :  { %1639 = vmatpush3.bf16.msra.mxu1 %v1638_v25  ;;  %1695 = vmatpush3.bf16.msra.mxu0 %v1694_v45  ;;  %v1698_v56 = vpack.c.bf16 %v88_v53, %v87_v49  ;;  %v50_v59 = vld [vmem:[%s3174_s1 + $0xe8] sm:$0xff]  ;;  %v1700_v60 = vpack.c.bf16 %v106_v58, %v105_v57  ;;  %v89_v61 = vld [vmem:[%s3174_s1 + $0x220] sm:$0xff]  ;;  %v107_v63 = vld [vmem:[%s3174_s1 + $0x2b0] sm:$0xff] }
   0xe   :  { %1641 = vmatprep.subr.bf16.mxu1 %v1640_v26  ;;  %1697 = vmatprep.subr.bf16.mxu0 %v1696_v48  ;;  %v90_v62 = vld [vmem:[%s3174_s1 + $0x228] sm:$0xff]  ;;  %v33_v1 = vld [vmem:[%s3174_s1 + $0x60] sm:$0xff]  ;;  %v108_v4 = vld [vmem:[%s3174_s1 + $0x2b8] sm:$0xff]  ;;  %v1652_v5 = vpack.c.bf16 %v50_v59, %v49_v55  ;;  %v388_v55 = vcombine.high %v2238_v40, %v2238_v40 }
   0xf   :  { %v34_v2 = vld [vmem:[%s3174_s1 + $0x68] sm:$0xff]  ;;  %v1702_v3 = vpack.c.bf16 %v90_v62, %v89_v61  ;;  %v51_v6 = vld [vmem:[%s3174_s1 + $0xf0] sm:$0xff]  ;;  %v1704_v7 = vpack.c.bf16 %v108_v4, %v107_v63  ;;  %v92_v9 = vld [vmem:[%s3174_s1 + $0x238] sm:$0xff] }
  0x10   :  { %v91_v8 = vld [vmem:[%s3174_s1 + $0x230] sm:$0xff]  ;;  %v52_v10 = vld [vmem:[%s3174_s1 + $0xf8] sm:$0xff]  ;;  %v109_v11 = vld [vmem:[%s3174_s1 + $0x2c0] sm:$0xff]  ;;  %v1654_v13 = vpack.c.bf16 %v34_v2, %v33_v1 }
  0x11   :  { %1643 = vmatpush3.bf16.msra.mxu1 %v1642_v34  ;;  %1699 = vmatpush3.bf16.msra.mxu0 %v1698_v56  ;;  %v110_v12 = vld [vmem:[%s3174_s1 + $0x2c8] sm:$0xff]  ;;  %v35_v14 = vld [vmem:[%s3174_s1 + $0x70] sm:$0xff]  ;;  %v36_v15 = vld [vmem:[%s3174_s1 + $0x78] sm:$0xff]  ;;  %v1706_v16 = vpack.c.bf16 %v92_v9, %v91_v8  ;;  %v1656_v17 = vpack.c.bf16 %v52_v10, %v51_v6 }
  0x12   :  { %1645 = vmatprep.subr.bf16.mxu1 %v1644_v38  ;;  %1701 = vmatprep.subr.bf16.mxu0 %v1700_v60  ;;  %v69_v18 = vld [vmem:[%s3174_s1 + $0x180] sm:$0xff]  ;;  %v1708_v19 = vpack.c.bf16 %v110_v12, %v109_v11  ;;  %v94_v21 = vld [vmem:[%s3174_s1 + $0x248] sm:$0xff]  ;;  %v111_v25 = vld [vmem:[%s3174_s1 + $0x2d0] sm:$0xff]  ;;  %v1658_v27 = vpack.c.bf16 %v36_v15, %v35_v14 }
  0x13   :  { %v93_v20 = vld [vmem:[%s3174_s1 + $0x240] sm:$0xff]  ;;  %v70_v23 = vld [vmem:[%s3174_s1 + $0x188] sm:$0xff]  ;;  %v112_v26 = vld [vmem:[%s3174_s1 + $0x2d8] sm:$0xff] }
  0x14   :  { %v53_v28 = vld [vmem:[%s3174_s1 + $0x100] sm:$0xff]  ;;  %v54_v29 = vld [vmem:[%s3174_s1 + $0x108] sm:$0xff]  ;;  %v1710_v30 = vpack.c.bf16 %v94_v21, %v93_v20  ;;  %v1660_v31 = vpack.c.bf16 %v70_v23, %v69_v18  ;;  %v71_v33 = vld [vmem:[%s3174_s1 + $0x190] sm:$0xff]  ;;  %v1712_v34 = vpack.c.bf16 %v112_v26, %v111_v25 }
  0x15   :  { %1647 = vmatpush3.bf16.msra.mxu1 %v1646_v50  ;;  %1703 = vmatpush3.bf16.msra.mxu0 %v1702_v3  ;;  %v95_v35 = vld [vmem:[%s3174_s1 + $0x250] sm:$0xff]  ;;  %v96_v36 = vld [vmem:[%s3174_s1 + $0x258] sm:$0xff]  ;;  %v113_v38 = vld [vmem:[%s3174_s1 + $0x2e0] sm:$0xff]  ;;  %v1662_v41 = vpack.c.bf16 %v54_v29, %v53_v28 }
  0x16   :  { %1649 = vmatprep.subr.bf16.mxu1 %v1648_v54  ;;  %1705 = vmatprep.subr.bf16.mxu0 %v1704_v7  ;;  %v72_v37 = vld [vmem:[%s3174_s1 + $0x198] sm:$0xff]  ;;  %v114_v39 = vld [vmem:[%s3174_s1 + $0x2e8] sm:$0xff]  ;;  %v55_v42 = vld [vmem:[%s3174_s1 + $0x110] sm:$0xff]  ;;  %v1714_v44 = vpack.c.bf16 %v96_v36, %v95_v35 }
  0x17   :  { %v56_v43 = vld [vmem:[%s3174_s1 + $0x118] sm:$0xff]  ;;  %v2249_v45 = vld [vmem:[%s3173_s0 + $0x8] sm:$0xff]  ;;  %v1664_v46 = vpack.c.bf16 %v72_v37, %v71_v33  ;;  %v73_v47 = vld [vmem:[%s3174_s1 + $0x1a0] sm:$0xff]  ;;  %v1716_v48 = vpack.c.bf16 %v114_v39, %v113_v38 }
  0x18   :  { %v97_v49 = vld [vmem:[%s3174_s1 + $0x260] sm:$0xff]  ;;  %v98_v50 = vld [vmem:[%s3174_s1 + $0x268] sm:$0xff]  ;;  %v396_v51 = vrot.slane %v2249_v45, %v2072_v24  ;;  %v115_v53 = vld [vmem:[%s3174_s1 + $0x2f0] sm:$0xff]  ;;  %v1666_v57 = vpack.c.bf16 %v56_v43, %v55_v42 }
  0x19   :  { %1651 = vmatpush3.bf16.msra.mxu1 %v1650_v0  ;;  %1707 = vmatpush3.bf16.msra.mxu0 %v1706_v16  ;;  %v74_v52 = vld [vmem:[%s3174_s1 + $0x1a8] sm:$0xff]  ;;  %v116_v54 = vld [vmem:[%s3174_s1 + $0x2f8] sm:$0xff]  ;;  %v57_v58 = vld [vmem:[%s3174_s1 + $0x120] sm:$0xff]  ;;  %v1718_v60 = vpack.c.bf16 %v98_v50, %v97_v49 }
  0x1a   :  { %1653 = vmatprep.subr.bf16.mxu1 %v1652_v5  ;;  %1709 = vmatprep.subr.bf16.mxu0 %v1708_v19  ;;  %v404_v56 = vcombine.high %v396_v51, %v396_v51  ;;  %v58_v59 = vld [vmem:[%s3174_s1 + $0x128] sm:$0xff]  ;;  %v1668_v61 = vpack.c.bf16 %v74_v52, %v73_v47  ;;  %v75_v62 = vld [vmem:[%s3174_s1 + $0x1b0] sm:$0xff]  ;;  %v100_v0 = vld [vmem:[%s3174_s1 + $0x278] sm:$0xff] }
  0x1b   :  { %v99_v63 = vld [vmem:[%s3174_s1 + $0x270] sm:$0xff]  ;;  %v76_v1 = vld [vmem:[%s3174_s1 + $0x1b8] sm:$0xff]  ;;  %v165_v2 = vld [vmem:[%s3174_s1 + $0x480] sm:$0xff]  ;;  %v1670_v4 = vpack.c.bf16 %v58_v59, %v57_v58 }
  0x1c   :  { %693 = vmatprep.mubr.f32.mxu0 %v404_v56  ;;  %v166_v3 = vld [vmem:[%s3174_s1 + $0x488] sm:$0xff]  ;;  %v59_v5 = vld [vmem:[%s3174_s1 + $0x130] sm:$0xff]  ;;  %v60_v6 = vld [vmem:[%s3174_s1 + $0x138] sm:$0xff]  ;;  %v1722_v7 = vpack.c.bf16 %v100_v0, %v99_v63  ;;  %v1672_v8 = vpack.c.bf16 %v76_v1, %v75_v62 }
  0x1d   :  { %1655 = vmatpush3.bf16.msra.mxu1 %v1654_v13  ;;  %1711 = vmatpush3.bf16.msra.mxu0 %v1710_v30  ;;  %v77_v9 = vld [vmem:[%s3174_s1 + $0x1c0] sm:$0xff]  ;;  %v1756_v10 = vpack.c.bf16 %v166_v3, %v165_v2  ;;  %v150_v12 = vld [vmem:[%s3174_s1 + $0x408] sm:$0xff]  ;;  %v167_v14 = vld [vmem:[%s3174_s1 + $0x490] sm:$0xff]  ;;  %v1674_v16 = vpack.c.bf16 %v60_v6, %v59_v5  ;;  %v389_v3 = vcombine.high %v2249_v45, %v2249_v45 }
  0x1e   :  { %1657 = vmatprep.subr.bf16.mxu1 %v1656_v17  ;;  %1713 = vmatprep.subr.bf16.mxu0 %v1712_v34  ;;  %v149_v11 = vld [vmem:[%s3174_s1 + $0x400] sm:$0xff]  ;;  %v78_v13 = vld [vmem:[%s3174_s1 + $0x1c8] sm:$0xff]  ;;  %v168_v15 = vld [vmem:[%s3174_s1 + $0x498] sm:$0xff] }
  0x1f   :  { %v61_v17 = vld [vmem:[%s3174_s1 + $0x140] sm:$0xff]  ;;  %v62_v18 = vld [vmem:[%s3174_s1 + $0x148] sm:$0xff]  ;;  %v1758_v19 = vpack.c.bf16 %v150_v12, %v149_v11  ;;  %v1676_v20 = vpack.c.bf16 %v78_v13, %v77_v9  ;;  %v79_v21 = vld [vmem:[%s3174_s1 + $0x1d0] sm:$0xff]  ;;  %v1760_v22 = vpack.c.bf16 %v168_v15, %v167_v14 }
  0x20   :  { %v151_v23 = vld [vmem:[%s3174_s1 + $0x410] sm:$0xff]  ;;  %v152_v25 = vld [vmem:[%s3174_s1 + $0x418] sm:$0xff]  ;;  %v170_v28 = vld [vmem:[%s3174_s1 + $0x4a8] sm:$0xff]  ;;  %v1678_v29 = vpack.c.bf16 %v62_v18, %v61_v17  ;;  %v2456_v18 = vrot.slane %v389_v3, %v2072_v24 }
  0x21   :  { %1659 = vmatpush3.bf16.msra.mxu1 %v1658_v27  ;;  %1715 = vmatpush3.bf16.msra.mxu0 %v1714_v44  ;;  %v80_v26 = vld [vmem:[%s3174_s1 + $0x1d8] sm:$0xff]  ;;  %v169_v27 = vld [vmem:[%s3174_s1 + $0x4a0] sm:$0xff]  ;;  %v63_v30 = vld [vmem:[%s3174_s1 + $0x150] sm:$0xff]  ;;  %v1762_v33 = vpack.c.bf16 %v152_v25, %v151_v23 }
  0x22   :  { %1661 = vmatprep.subr.bf16.mxu1 %v1660_v31  ;;  %1717 = vmatprep.subr.bf16.mxu0 %v1716_v48  ;;  %v64_v31 = vld [vmem:[%s3174_s1 + $0x158] sm:$0xff]  ;;  %v1680_v34 = vpack.c.bf16 %v80_v26, %v79_v21  ;;  %v81_v35 = vld [vmem:[%s3174_s1 + $0x1e0] sm:$0xff]  ;;  %v1764_v36 = vpack.c.bf16 %v170_v28, %v169_v27  ;;  %v154_v38 = vld [vmem:[%s3174_s1 + $0x428] sm:$0xff] }
  0x23   :  { %v153_v37 = vld [vmem:[%s3174_s1 + $0x420] sm:$0xff]  ;;  %v82_v39 = vld [vmem:[%s3174_s1 + $0x1e8] sm:$0xff]  ;;  %v172_v42 = vld [vmem:[%s3174_s1 + $0x4b8] sm:$0xff]  ;;  %v1682_v43 = vpack.c.bf16 %v64_v31, %v63_v30 }
  0x24   :  { %554 = vmatmul.mubr.f32.vlgmr.msra.gmra.mrb[0].mxu1 %v2093_v32  ;;  %v1720_v32 = vpack.c.bf16 %v116_v54, %v115_v53  ;;  %v65_v44 = vld [vmem:[%s3174_s1 + $0x160] sm:$0xff]  ;;  %v83_v47 = vld [vmem:[%s3174_s1 + $0x1f0] sm:$0xff]  ;;  %v1766_v48 = vpack.c.bf16 %v154_v38, %v153_v37  ;;  %v1684_v49 = vpack.c.bf16 %v82_v39, %v81_v35  ;;  %v84_v50 = vld [vmem:[%s3174_s1 + $0x1f8] sm:$0xff] }
  0x25   :  { %1663 = vmatpush3.bf16.msra.mxu1 %v1662_v41  ;;  %623 = vmatprep.mubr.f32.mxu1 %v388_v55  ;;  %v171_v41 = vld [vmem:[%s3174_s1 + $0x4b0] sm:$0xff]  ;;  %v156_v53 = vld [vmem:[%s3174_s1 + $0x438] sm:$0xff]  ;;  %v173_v54 = vld [vmem:[%s3174_s1 + $0x4c0] sm:$0xff]  ;;  %v1688_v62 = vpack.c.bf16 %v84_v50, %v83_v47 }
  0x26   :  { %1665 = vmatprep.subr.bf16.mxu1 %v1664_v46  ;;  %1719 = vmatpush3.bf16.msra.mxu0 %v1718_v60  ;;  %v66_v46 = vld [vmem:[%s3174_s1 + $0x168] sm:$0xff]  ;;  %v155_v52 = vld [vmem:[%s3174_s1 + $0x430] sm:$0xff]  ;;  %v68_v60 = vld [vmem:[%s3174_s1 + $0x178] sm:$0xff] }
  0x27   :  { %1721 = vmatprep.subr.bf16.mxu0 %v1720_v32  ;;  %v174_v55 = vld [vmem:[%s3174_s1 + $0x4c8] sm:$0xff]  ;;  %v2397_v56 = vld [vmem:[%s3173_s0 + $0x10] sm:$0xff]  ;;  %v1686_v58 = vpack.c.bf16 %v66_v46, %v65_v44  ;;  %v133_v32 = vld [vmem:[%s3174_s1 + $0x380] sm:$0xff] }
  0x28   :  { %v67_v59 = vld [vmem:[%s3174_s1 + $0x170] sm:$0xff]  ;;  %v1772_v63 = vpack.c.bf16 %v174_v55, %v173_v54  ;;  %v157_v0 = vld [vmem:[%s3174_s1 + $0x440] sm:$0xff]  ;;  %v158_v1 = vld [vmem:[%s3174_s1 + $0x448] sm:$0xff] }
  0x29   :  { %1667 = vmatpush3.bf16.msra.mxu1 %v1666_v57  ;;  %v2401_v57 = vrot.slane %v2397_v56, %v2072_v24  ;;  %v175_v5 = vld [vmem:[%s3174_s1 + $0x4d0] sm:$0xff]  ;;  %v176_v6 = vld [vmem:[%s3174_s1 + $0x4d8] sm:$0xff]  ;;  %v118_v45 = vld [vmem:[%s3174_s1 + $0x308] sm:$0xff]  ;;  %v1774_v9 = vpack.c.bf16 %v158_v1, %v157_v0 }
  0x2a   :  { %1669 = vmatprep.subr.bf16.mxu1 %v1668_v61  ;;  %1723 = vmatpush3.bf16.msra.mxu0 %v1722_v7  ;;  %v1770_v61 = vpack.c.bf16 %v156_v53, %v155_v52  ;;  %v1690_v7 = vpack.c.bf16 %v68_v60, %v67_v59  ;;  %v135_v11 = vld [vmem:[%s3174_s1 + $0x390] sm:$0xff]  ;;  %v1776_v12 = vpack.c.bf16 %v176_v6, %v175_v5  ;;  %v160_v14 = vld [vmem:[%s3174_s1 + $0x458] sm:$0xff]  ;;  %v178_v17 = vld [vmem:[%s3174_s1 + $0x4e8] sm:$0xff] }
  0x2b   :  { %1757 = vmatprep.subr.bf16.mxu0 %v1756_v10  ;;  %v421_v2 = vcombine.high %v2401_v57, %v2401_v57  ;;  %v159_v13 = vld [vmem:[%s3174_s1 + $0x450] sm:$0xff]  ;;  %v136_v15 = vld [vmem:[%s3174_s1 + $0x398] sm:$0xff]  ;;  %v137_v25 = vld [vmem:[%s3174_s1 + $0x3a0] sm:$0xff] }
  0x2c   :  { %v120_v21 = vld [vmem:[%s3174_s1 + $0x318] sm:$0xff]  ;;  %v1728_v23 = vpack.c.bf16 %v136_v15, %v135_v11  ;;  %v161_v27 = vld [vmem:[%s3174_s1 + $0x460] sm:$0xff]  ;;  %v162_v28 = vld [vmem:[%s3174_s1 + $0x468] sm:$0xff] }
  0x2d   :  { %1671 = vmatpush3.bf16.msra.mxu1 %v1670_v4  ;;  %694 = vmatmul.mubr.f32.vlgmr.msra.gmra.mrb[0].mxu0 %v396_v51  ;;  %v1768_v51 = vpack.c.bf16 %v172_v42, %v171_v41  ;;  %v134_v4 = vld [vmem:[%s3174_s1 + $0x388] sm:$0xff]  ;;  %v179_v30 = vld [vmem:[%s3174_s1 + $0x4f0] sm:$0xff]  ;;  %v180_v31 = vld [vmem:[%s3174_s1 + $0x4f8] sm:$0xff]  ;;  %v1782_v37 = vpack.c.bf16 %v162_v28, %v161_v27 }
  0x2e   :  { %1673 = vmatprep.subr.bf16.mxu1 %v1672_v8  ;;  %1759 = vmatpush3.bf16.msra.mxu0 %v1758_v19  ;;  %v117_v8 = vld [vmem:[%s3174_s1 + $0x300] sm:$0xff]  ;;  %v1724_v10 = vpack.c.bf16 %v134_v4, %v133_v32  ;;  %v139_v39 = vld [vmem:[%s3174_s1 + $0x3b0] sm:$0xff]  ;;  %v164_v42 = vld [vmem:[%s3174_s1 + $0x478] sm:$0xff] }
  0x2f   :  { %1761 = vmatprep.subr.bf16.mxu0 %v1760_v22  ;;  %833 = vmatprep.mubr.f32.mxu0 %v421_v2  ;;  %v1726_v19 = vpack.c.bf16 %v118_v45, %v117_v8  ;;  %v1778_v22 = vpack.c.bf16 %v160_v14, %v159_v13  ;;  %v121_v35 = vld [vmem:[%s3174_s1 + $0x320] sm:$0xff]  ;;  %v163_v41 = vld [vmem:[%s3174_s1 + $0x470] sm:$0xff]  ;;  %v230_v46 = vld [vmem:[%s3174_s1 + $0x688] sm:$0xff] }
  0x30   :  { %v229_v44 = vld [vmem:[%s3174_s1 + $0x680] sm:$0xff]  ;;  %v1786_v50 = vpack.c.bf16 %v164_v42, %v163_v41  ;;  %v214_v55 = vld [vmem:[%s3174_s1 + $0x608] sm:$0xff]  ;;  %v231_v59 = vld [vmem:[%s3174_s1 + $0x690] sm:$0xff] }
  0x31   :  { %1675 = vmatpush3.bf16.msra.mxu1 %v1674_v16  ;;  %v177_v16 = vld [vmem:[%s3174_s1 + $0x4e0] sm:$0xff]  ;;  %v1820_v53 = vpack.c.bf16 %v230_v46, %v229_v44  ;;  %v232_v60 = vld [vmem:[%s3174_s1 + $0x698] sm:$0xff]  ;;  %v143_v3 = vld [vmem:[%s3174_s1 + $0x3d0] sm:$0xff] }
  0x32   :  { %1677 = vmatprep.subr.bf16.mxu1 %v1676_v20  ;;  %1763 = vmatpush3.bf16.msra.mxu0 %v1762_v33  ;;  %v119_v20 = vld [vmem:[%s3174_s1 + $0x310] sm:$0xff]  ;;  %v1780_v26 = vpack.c.bf16 %v178_v17, %v177_v16  ;;  %v405_v33 = vcombine.high %v2456_v18, %v2456_v18  ;;  %v141_v52 = vld [vmem:[%s3174_s1 + $0x3c0] sm:$0xff]  ;;  %v1824_v4 = vpack.c.bf16 %v232_v60, %v231_v59  ;;  %v216_v6 = vld [vmem:[%s3174_s1 + $0x618] sm:$0xff] }
  0x33   :  { %1765 = vmatprep.subr.bf16.mxu0 %v1764_v36  ;;  %v122_v36 = vld [vmem:[%s3174_s1 + $0x328] sm:$0xff]  ;;  %v213_v54 = vld [vmem:[%s3174_s1 + $0x600] sm:$0xff]  ;;  %v215_v5 = vld [vmem:[%s3174_s1 + $0x610] sm:$0xff] }
  0x34   :  { %v1734_v47 = vpack.c.bf16 %v122_v36, %v121_v35  ;;  %v125_v32 = vld [vmem:[%s3174_s1 + $0x340] sm:$0xff]  ;;  %v1822_v0 = vpack.c.bf16 %v214_v55, %v213_v54  ;;  %v234_v45 = vld [vmem:[%s3174_s1 + $0x6a8] sm:$0xff]  ;;  %v127_v11 = vld [vmem:[%s3174_s1 + $0x350] sm:$0xff]  ;;  %v1826_v13 = vpack.c.bf16 %v216_v6, %v215_v5 }
  0x35   :  { %1679 = vmatpush3.bf16.msra.mxu1 %v1678_v29  ;;  %v138_v29 = vld [vmem:[%s3174_s1 + $0x3a8] sm:$0xff]  ;;  %v233_v8 = vld [vmem:[%s3174_s1 + $0x6a0] sm:$0xff]  ;;  %v147_v28 = vld [vmem:[%s3174_s1 + $0x3f0] sm:$0xff] }
  0x36   :  { %1681 = vmatprep.subr.bf16.mxu1 %v1680_v34  ;;  %1767 = vmatpush3.bf16.msra.mxu0 %v1766_v48  ;;  %v1730_v34 = vpack.c.bf16 %v120_v21, %v119_v20  ;;  %v1732_v38 = vpack.c.bf16 %v138_v29, %v137_v25  ;;  %v123_v48 = vld [vmem:[%s3174_s1 + $0x330] sm:$0xff]  ;;  %v145_v15 = vld [vmem:[%s3174_s1 + $0x3e0] sm:$0xff]  ;;  %v218_v17 = vld [vmem:[%s3174_s1 + $0x628] sm:$0xff] }
  0x37   :  { %1769 = vmatprep.subr.bf16.mxu0 %v1768_v51  ;;  %v217_v16 = vld [vmem:[%s3174_s1 + $0x620] sm:$0xff]  ;;  %v235_v20 = vld [vmem:[%s3174_s1 + $0x6b0] sm:$0xff]  ;;  %v236_v21 = vld [vmem:[%s3174_s1 + $0x6b8] sm:$0xff] }
  0x38   :  { %v130_v25 = vld [vmem:[%s3174_s1 + $0x368] sm:$0xff]  ;;  %v1832_v29 = vpack.c.bf16 %v236_v21, %v235_v20  ;;  %v197_v41 = vld [vmem:[%s3174_s1 + $0x580] sm:$0xff]  ;;  %v199_v55 = vld [vmem:[%s3174_s1 + $0x590] sm:$0xff] }
  0x39   :  { %1683 = vmatpush3.bf16.msra.mxu1 %v1682_v43  ;;  %v140_v43 = vld [vmem:[%s3174_s1 + $0x3b8] sm:$0xff]  ;;  %v238_v35 = vld [vmem:[%s3174_s1 + $0x6c8] sm:$0xff]  ;;  %v201_v6 = vld [vmem:[%s3174_s1 + $0x5a0] sm:$0xff] }
  0x3a   :  { %1685 = vmatprep.subr.bf16.mxu1 %v1684_v49  ;;  %1771 = vmatpush3.bf16.msra.mxu0 %v1770_v61  ;;  %v124_v49 = vld [vmem:[%s3174_s1 + $0x338] sm:$0xff]  ;;  %v1736_v51 = vpack.c.bf16 %v140_v43, %v139_v39  ;;  %v221_v43 = vld [vmem:[%s3174_s1 + $0x640] sm:$0xff]  ;;  %v222_v44 = vld [vmem:[%s3174_s1 + $0x648] sm:$0xff] }
  0x3b   :  { %1773 = vmatprep.subr.bf16.mxu0 %v1772_v63  ;;  %v2536_v61 = vld [vmem:[%s3173_s0 + $0x18] sm:$0xff]  ;;  %v126_v63 = vld [vmem:[%s3174_s1 + $0x348] sm:$0xff] }
  0x3c   :  { %v2546_v1 = vrot.slane %v2536_v61, %v2072_v24  ;;  %v198_v46 = vld [vmem:[%s3174_s1 + $0x588] sm:$0xff]  ;;  %v224_v59 = vld [vmem:[%s3174_s1 + $0x658] sm:$0xff] }
  0x3d   :  { %1687 = vmatpush3.bf16.msra.mxu1 %v1686_v58  ;;  %v142_v58 = vld [vmem:[%s3174_s1 + $0x3c8] sm:$0xff]  ;;  %v1788_v54 = vpack.c.bf16 %v198_v46, %v197_v41  ;;  %v200_v60 = vld [vmem:[%s3174_s1 + $0x598] sm:$0xff]  ;;  %v189_v41 = vld [vmem:[%s3174_s1 + $0x540] sm:$0xff] }
  0x3e   :  { %1689 = vmatprep.subr.bf16.mxu1 %v1688_v62  ;;  %1775 = vmatpush3.bf16.msra.mxu0 %v1774_v9  ;;  %v1738_v62 = vpack.c.bf16 %v124_v49, %v123_v48  ;;  %v1740_v2 = vpack.c.bf16 %v142_v58, %v141_v52  ;;  %v438_v9 = vcombine.high %v2546_v1, %v2546_v1  ;;  %v240_v48 = vld [vmem:[%s3174_s1 + $0x6d8] sm:$0xff]  ;;  %v182_v52 = vld [vmem:[%s3174_s1 + $0x508] sm:$0xff]  ;;  %v223_v58 = vld [vmem:[%s3174_s1 + $0x650] sm:$0xff] }
  0x3f   :  { %1777 = vmatprep.subr.bf16.mxu0 %v1776_v12  ;;  %v128_v12 = vld [vmem:[%s3174_s1 + $0x358] sm:$0xff]  ;;  %v406_v49 = vcombine.high %v2397_v56, %v2397_v56  ;;  %v1792_v5 = vpack.c.bf16 %v200_v60, %v199_v55  ;;  %v207_v46 = vld [vmem:[%s3174_s1 + $0x5d0] sm:$0xff]  ;;  %v209_v60 = vld [vmem:[%s3174_s1 + $0x5e0] sm:$0xff] }
  0x40   :  { %v228_v20 = vld [vmem:[%s3174_s1 + $0x678] sm:$0xff]  ;;  %v191_v55 = vld [vmem:[%s3174_s1 + $0x550] sm:$0xff] }
  0x41   :  { %1691 = vmatpush3.bf16.msra.mxu1 %v1690_v7  ;;  %v144_v7 = vld [vmem:[%s3174_s1 + $0x3d8] sm:$0xff] }
  0x42   :  { %1725 = vmatprep.subr.bf16.mxu1 %v1724_v10  ;;  %1779 = vmatpush3.bf16.msra.mxu0 %v1778_v22  ;;  %v1742_v10 = vpack.c.bf16 %v126_v63, %v125_v32  ;;  %v1744_v14 = vpack.c.bf16 %v144_v7, %v143_v3  ;;  %v1746_v22 = vpack.c.bf16 %v128_v12, %v127_v11  ;;  %v242_v32 = vld [vmem:[%s3174_s1 + $0x6e8] sm:$0xff]  ;;  %v184_v3 = vld [vmem:[%s3174_s1 + $0x518] sm:$0xff] }
  0x43   :  { %1781 = vmatprep.subr.bf16.mxu0 %v1780_v26  ;;  %v1830_v26 = vpack.c.bf16 %v218_v17, %v217_v16  ;;  %v2668_v63 = vrot.slane %v406_v49, %v2072_v24  ;;  %v244_v11 = vld [vmem:[%s3174_s1 + $0x6f8] sm:$0xff]  ;;  %v203_v17 = vld [vmem:[%s3174_s1 + $0x5b0] sm:$0xff] }
  0x44   :  { %624 = vmatmul.mubr.f32.vlgmr.msra.gmra.mrb[2].mxu1 %v2238_v40  ;;  %v1784_v40 = vpack.c.bf16 %v180_v31, %v179_v30  ;;  %v219_v30 = vld [vmem:[%s3174_s1 + $0x630] sm:$0xff]  ;;  %v220_v31 = vld [vmem:[%s3174_s1 + $0x638] sm:$0xff] }
  0x45   :  { %1727 = vmatpush3.bf16.msra.mxu1 %v1726_v19  ;;  %763 = vmatprep.mubr.f32.mxu1 %v405_v33  ;;  %v146_v19 = vld [vmem:[%s3174_s1 + $0x3e8] sm:$0xff]  ;;  %v148_v33 = vld [vmem:[%s3174_s1 + $0x3f8] sm:$0xff]  ;;  %v1834_v39 = vpack.c.bf16 %v220_v31, %v219_v30  ;;  %v422_v12 = vcombine.high %v2668_v63, %v2668_v63  ;;  %v205_v31 = vld [vmem:[%s3174_s1 + $0x5c0] sm:$0xff] }
  0x46   :  { %1729 = vmatprep.subr.bf16.mxu1 %v1728_v23  ;;  %1783 = vmatpush3.bf16.msra.mxu0 %v1782_v37  ;;  %v129_v23 = vld [vmem:[%s3174_s1 + $0x360] sm:$0xff]  ;;  %v1748_v27 = vpack.c.bf16 %v146_v19, %v145_v15  ;;  %v131_v37 = vld [vmem:[%s3174_s1 + $0x370] sm:$0xff]  ;;  %v186_v15 = vld [vmem:[%s3174_s1 + $0x528] sm:$0xff] }
  0x47   :  { %1785 = vmatprep.subr.bf16.mxu0 %v1784_v40  ;;  %v1750_v36 = vpack.c.bf16 %v130_v25, %v129_v23  ;;  %v1752_v40 = vpack.c.bf16 %v148_v33, %v147_v28  ;;  %v227_v19 = vld [vmem:[%s3174_s1 + $0x670] sm:$0xff]  ;;  %v204_v21 = vld [vmem:[%s3174_s1 + $0x5b8] sm:$0xff]  ;;  %v294_v23 = vld [vmem:[%s3174_s1 + $0x888] sm:$0xff] }
  0x48   :  { %v2724_v25 = vld [vmem:[%s3173_s0 + $0x20] sm:$0xff]  ;;  %v188_v28 = vld [vmem:[%s3174_s1 + $0x538] sm:$0xff]  ;;  %v1800_v30 = vpack.c.bf16 %v204_v21, %v203_v17 }
  0x49   :  { %1731 = vmatpush3.bf16.msra.mxu1 %v1730_v34  ;;  %v237_v34 = vld [vmem:[%s3174_s1 + $0x6c0] sm:$0xff]  ;;  %v280_v49 = vld [vmem:[%s3174_s1 + $0x818] sm:$0xff] }
  0x4a   :  { %1733 = vmatprep.subr.bf16.mxu1 %v1732_v38  ;;  %1787 = vmatpush3.bf16.msra.mxu0 %v1786_v50  ;;  %v132_v38 = vld [vmem:[%s3174_s1 + $0x378] sm:$0xff]  ;;  %v1836_v42 = vpack.c.bf16 %v238_v35, %v237_v34  ;;  %v277_v34 = vld [vmem:[%s3174_s1 + $0x800] sm:$0xff]  ;;  %v278_v35 = vld [vmem:[%s3174_s1 + $0x808] sm:$0xff] }
  0x4b   :  { %1821 = vmatprep.subr.bf16.mxu0 %v1820_v53  ;;  %v1754_v50 = vpack.c.bf16 %v132_v38, %v131_v37  ;;  %v1838_v53 = vpack.c.bf16 %v222_v44, %v221_v43  ;;  %v295_v37 = vld [vmem:[%s3174_s1 + $0x890] sm:$0xff]  ;;  %v296_v38 = vld [vmem:[%s3174_s1 + $0x898] sm:$0xff]  ;;  %v1886_v43 = vpack.c.bf16 %v278_v35, %v277_v34 }
  0x4d   :  { %1735 = vmatpush3.bf16.msra.mxu1 %v1734_v47  ;;  %834 = vmatmul.mubr.f32.vlgmr.msra.gmra.mrb[2].mxu0 %v2401_v57  ;;  %v1828_v57 = vpack.c.bf16 %v234_v45, %v233_v8  ;;  %v239_v47 = vld [vmem:[%s3174_s1 + $0x6d0] sm:$0xff]  ;;  %v225_v8 = vld [vmem:[%s3174_s1 + $0x660] sm:$0xff]  ;;  %v226_v45 = vld [vmem:[%s3174_s1 + $0x668] sm:$0xff] }
  0x4e   :  { %1737 = vmatprep.subr.bf16.mxu1 %v1736_v51  ;;  %1823 = vmatpush3.bf16.msra.mxu0 %v1822_v0  ;;  %v181_v51 = vld [vmem:[%s3174_s1 + $0x500] sm:$0xff]  ;;  %v1840_v56 = vpack.c.bf16 %v240_v48, %v239_v47  ;;  %v1888_v47 = vpack.c.bf16 %v296_v38, %v295_v37  ;;  %v279_v48 = vld [vmem:[%s3174_s1 + $0x810] sm:$0xff] }
  0x4f   :  { %1825 = vmatprep.subr.bf16.mxu0 %v1824_v4  ;;  %973 = vmatprep.mubr.f32.mxu0 %v438_v9  ;;  %v1790_v0 = vpack.c.bf16 %v182_v52, %v181_v51  ;;  %v1842_v4 = vpack.c.bf16 %v224_v59, %v223_v58  ;;  %v202_v9 = vld [vmem:[%s3174_s1 + $0x5a8] sm:$0xff]  ;;  %v297_v51 = vld [vmem:[%s3174_s1 + $0x8a0] sm:$0xff]  ;;  %v1890_v58 = vpack.c.bf16 %v280_v49, %v279_v48 }
  0x50   :  { %v1796_v16 = vpack.c.bf16 %v202_v9, %v201_v6  ;;  %v298_v52 = vld [vmem:[%s3174_s1 + $0x8a8] sm:$0xff] }
  0x51   :  { %1739 = vmatpush3.bf16.msra.mxu1 %v1738_v62  ;;  %v241_v62 = vld [vmem:[%s3174_s1 + $0x6e0] sm:$0xff] }
  0x52   :  { %1741 = vmatprep.subr.bf16.mxu1 %v1740_v2  ;;  %1827 = vmatpush3.bf16.msra.mxu0 %v1826_v13  ;;  %v183_v2 = vld [vmem:[%s3174_s1 + $0x510] sm:$0xff]  ;;  %v1844_v7 = vpack.c.bf16 %v242_v32, %v241_v62  ;;  %v281_v62 = vld [vmem:[%s3174_s1 + $0x820] sm:$0xff]  ;;  %v282_v32 = vld [vmem:[%s3174_s1 + $0x828] sm:$0xff] }
  0x53   :  { %1829 = vmatprep.subr.bf16.mxu0 %v1828_v57  ;;  %v1794_v13 = vpack.c.bf16 %v184_v3, %v183_v2  ;;  %v1846_v57 = vpack.c.bf16 %v226_v45, %v225_v8  ;;  %v299_v2 = vld [vmem:[%s3174_s1 + $0x8b0] sm:$0xff]  ;;  %v300_v3 = vld [vmem:[%s3174_s1 + $0x8b8] sm:$0xff] }
  0x55   :  { %1743 = vmatpush3.bf16.msra.mxu1 %v1742_v10  ;;  %v243_v10 = vld [vmem:[%s3174_s1 + $0x6f0] sm:$0xff] }
  0x56   :  { %1745 = vmatprep.subr.bf16.mxu1 %v1744_v14  ;;  %1831 = vmatpush3.bf16.msra.mxu0 %v1830_v26  ;;  %v185_v14 = vld [vmem:[%s3174_s1 + $0x520] sm:$0xff] }
  0x57   :  { %1833 = vmatprep.subr.bf16.mxu0 %v1832_v29  ;;  %v1798_v26 = vpack.c.bf16 %v186_v15, %v185_v14  ;;  %v1850_v29 = vpack.c.bf16 %v228_v20, %v227_v19 }
  0x59   :  { %1747 = vmatpush3.bf16.msra.mxu1 %v1746_v22  ;;  %v293_v22 = vld [vmem:[%s3174_s1 + $0x880] sm:$0xff] }
  0x5a   :  { %1749 = vmatprep.subr.bf16.mxu1 %v1748_v27  ;;  %1835 = vmatpush3.bf16.msra.mxu0 %v1834_v39  ;;  %v187_v27 = vld [vmem:[%s3174_s1 + $0x530] sm:$0xff]  ;;  %v1884_v33 = vpack.c.bf16 %v294_v23, %v293_v22  ;;  %v2752_v39 = vrot.slane %v2724_v25, %v2072_v24 }
  0x5b   :  { %1837 = vmatprep.subr.bf16.mxu0 %v1836_v42  ;;  %v190_v42 = vld [vmem:[%s3174_s1 + $0x548] sm:$0xff] }
  0x5d   :  { %1751 = vmatpush3.bf16.msra.mxu1 %v1750_v36  ;;  %v206_v36 = vld [vmem:[%s3174_s1 + $0x5c8] sm:$0xff] }
  0x5e   :  { %1753 = vmatprep.subr.bf16.mxu1 %v1752_v40  ;;  %1839 = vmatpush3.bf16.msra.mxu0 %v1838_v53  ;;  %v1802_v40 = vpack.c.bf16 %v188_v28, %v187_v27  ;;  %v1804_v44 = vpack.c.bf16 %v206_v36, %v205_v31  ;;  %v455_v53 = vcombine.high %v2752_v39, %v2752_v39 }
  0x5f   :  { %1841 = vmatprep.subr.bf16.mxu0 %v1840_v56  ;;  %v192_v56 = vld [vmem:[%s3174_s1 + $0x558] sm:$0xff] }
  0x61   :  { %1755 = vmatpush3.bf16.msra.mxu1 %v1754_v50  ;;  %v208_v50 = vld [vmem:[%s3174_s1 + $0x5d8] sm:$0xff] }
  0x62   :  { %1789 = vmatprep.subr.bf16.mxu1 %v1788_v54  ;;  %1843 = vmatpush3.bf16.msra.mxu0 %v1842_v4  ;;  %v1806_v54 = vpack.c.bf16 %v190_v42, %v189_v41  ;;  %v1808_v59 = vpack.c.bf16 %v208_v50, %v207_v46 }
  0x63   :  { %1845 = vmatprep.subr.bf16.mxu0 %v1844_v7 }
  0x64   :  { %764 = vmatmul.mubr.f32.vlgmr.msra.gmra.mrb[4].mxu1 %v2456_v18  ;;  %v1848_v18 = vpack.c.bf16 %v244_v11, %v243_v10 }
  0x65   :  { %1791 = vmatpush3.bf16.msra.mxu1 %v1790_v0  ;;  %903 = vmatprep.mubr.f32.mxu1 %v422_v12  ;;  %v210_v0 = vld [vmem:[%s3174_s1 + $0x5e8] sm:$0xff] }
  0x66   :  { %1793 = vmatprep.subr.bf16.mxu1 %v1792_v5  ;;  %1847 = vmatpush3.bf16.msra.mxu0 %v1846_v57 }
  0x67   :  { %1849 = vmatprep.subr.bf16.mxu0 %v1848_v18 }
  0x69   :  { %1795 = vmatpush3.bf16.msra.mxu1 %v1794_v13 }
  0x6a   :  { %1797 = vmatprep.subr.bf16.mxu1 %v1796_v16  ;;  %1851 = vmatpush3.bf16.msra.mxu0 %v1850_v29 }
  0x6b   :  { %1885 = vmatprep.subr.bf16.mxu0 %v1884_v33 }
  0x6d   :  { %1799 = vmatpush3.bf16.msra.mxu1 %v1798_v26  ;;  %974 = vmatmul.mubr.f32.vlgmr.msra.gmra.mrb[4].mxu0 %v2546_v1  ;;  %v1892_v1 = vpack.c.bf16 %v298_v52, %v297_v51 }
  0x6e   :  { %1801 = vmatprep.subr.bf16.mxu1 %v1800_v30  ;;  %1887 = vmatpush3.bf16.msra.mxu0 %v1886_v43 }
  0x6f   :  { %1889 = vmatprep.subr.bf16.mxu0 %v1888_v47  ;;  %1113 = vmatprep.mubr.f32.mxu0 %v455_v53 }
  0x71   :  { %1803 = vmatpush3.bf16.msra.mxu1 %v1802_v40 }
  0x72   :  { %1805 = vmatprep.subr.bf16.mxu1 %v1804_v44 }
  0x73   :  { %8 = vsyncpa [#allocation3], 0  ;;  %v1810_v4 = vpack.c.bf16 %v192_v56, %v191_v55  ;;  %v193_v5 = vld [vmem:[%s3174_s1 + $0x560] sm:$0xff]  ;;  %v194_v6 = vld [vmem:[%s3174_s1 + $0x568] sm:$0xff]  ;;  %1891 = vmatpush3.bf16.msra.mxu0 %v1890_v58  ;;  %v1894_v7 = vpack.c.bf16 %v282_v32, %v281_v62  ;;  %v1812_v8 = vpack.c.bf16 %v210_v0, %v209_v60  ;;  %v1896_v9 = vpack.c.bf16 %v300_v3, %v299_v2 }
  0x74   :  { %v211_v45 = vld [vmem:[%s3174_s1 + $0x5f0] sm:$0xff]  ;;  %1893 = vmatprep.subr.bf16.mxu0 %v1892_v1  ;;  %v284_v11 = vld [vmem:[%s3174_s1 + $0x838] sm:$0xff]  ;;  %v301_v13 = vld [vmem:[%s3174_s1 + $0x8c0] sm:$0xff]  ;;  %v1814_v15 = vpack.c.bf16 %v194_v6, %v193_v5  ;;  %v423_v28 = vcombine.high %v2536_v61, %v2536_v61  ;;  %vm486_vm0 = vcmask 130048   ;;  %vm1259_vm1 = vcmask 74752  }
  0x75   :  { %1807 = vmatpush3.bf16.msra.mxu1 %v1806_v54  ;;  %v283_v10 = vld [vmem:[%s3174_s1 + $0x830] sm:$0xff]  ;;  %v212_v12 = vld [vmem:[%s3174_s1 + $0x5f8] sm:$0xff]  ;;  %v302_v14 = vld [vmem:[%s3174_s1 + $0x8c8] sm:$0xff] }
  0x76   :  { %1809 = vmatprep.subr.bf16.mxu1 %v1808_v59  ;;  %v195_v57 = vld [vmem:[%s3174_s1 + $0x570] sm:$0xff]  ;;  %v196_v16 = vld [vmem:[%s3174_s1 + $0x578] sm:$0xff]  ;;  %v1898_v17 = vpack.c.bf16 %v284_v11, %v283_v10  ;;  %v1816_v18 = vpack.c.bf16 %v212_v12, %v211_v45  ;;  %v261_v19 = vld [vmem:[%s3174_s1 + $0x780] sm:$0xff]  ;;  %v1900_v20 = vpack.c.bf16 %v302_v14, %v301_v13  ;;  %v2880_v42 = vrot.slane %v423_v28, %v2072_v24 }
  0x77   :  { %1895 = vmatpush3.bf16.msra.mxu0 %v1894_v7  ;;  %v285_v21 = vld [vmem:[%s3174_s1 + $0x840] sm:$0xff]  ;;  %v286_v22 = vld [vmem:[%s3174_s1 + $0x848] sm:$0xff]  ;;  %v303_v26 = vld [vmem:[%s3174_s1 + $0x8d0] sm:$0xff]  ;;  %v1818_v29 = vpack.c.bf16 %v196_v16, %v195_v57 }
  0x78   :  { %1897 = vmatprep.subr.bf16.mxu0 %v1896_v9  ;;  %v262_v23 = vld [vmem:[%s3174_s1 + $0x788] sm:$0xff]  ;;  %v304_v27 = vld [vmem:[%s3174_s1 + $0x8d8] sm:$0xff]  ;;  %v245_v30 = vld [vmem:[%s3174_s1 + $0x700] sm:$0xff]  ;;  %v1902_v33 = vpack.c.bf16 %v286_v22, %v285_v21  ;;  %v439_v56 = vcombine.high %v2880_v42, %v2880_v42 }
  0x79   :  { %1811 = vmatpush3.bf16.msra.mxu1 %v1810_v4  ;;  %v246_v31 = vld [vmem:[%s3174_s1 + $0x708] sm:$0xff]  ;;  %v1852_v34 = vpack.c.bf16 %v262_v23, %v261_v19  ;;  %v263_v35 = vld [vmem:[%s3174_s1 + $0x790] sm:$0xff]  ;;  %v1904_v61 = vpack.c.bf16 %v304_v27, %v303_v26  ;;  %v288_v37 = vld [vmem:[%s3174_s1 + $0x858] sm:$0xff] }
  0x7a   :  { %1813 = vmatprep.subr.bf16.mxu1 %v1812_v8  ;;  %v287_v36 = vld [vmem:[%s3174_s1 + $0x850] sm:$0xff]  ;;  %v264_v38 = vld [vmem:[%s3174_s1 + $0x798] sm:$0xff]  ;;  %v305_v40 = vld [vmem:[%s3174_s1 + $0x8e0] sm:$0xff]  ;;  %v1854_v43 = vpack.c.bf16 %v246_v31, %v245_v30 }
  0x7b   :  { %1899 = vmatpush3.bf16.msra.mxu0 %v1898_v17  ;;  %v306_v41 = vld [vmem:[%s3174_s1 + $0x8e8] sm:$0xff]  ;;  %v247_v44 = vld [vmem:[%s3174_s1 + $0x710] sm:$0xff]  ;;  %v248_v46 = vld [vmem:[%s3174_s1 + $0x718] sm:$0xff]  ;;  %v1906_v47 = vpack.c.bf16 %v288_v37, %v287_v36  ;;  %v1856_v48 = vpack.c.bf16 %v264_v38, %v263_v35  ;;  %v2008_v17 = vmov 0.0|0.0  }
  0x7c   :  { %1901 = vmatprep.subr.bf16.mxu0 %v1900_v20  ;;  %v265_v49 = vld [vmem:[%s3174_s1 + $0x7a0] sm:$0xff]  ;;  %v1908_v50 = vpack.c.bf16 %v306_v41, %v305_v40  ;;  %v290_v52 = vld [vmem:[%s3174_s1 + $0x868] sm:$0xff]  ;;  %v307_v54 = vld [vmem:[%s3174_s1 + $0x8f0] sm:$0xff]  ;;  %v1858_v58 = vpack.c.bf16 %v248_v46, %v247_v44 }
  0x7d   :  { %1815 = vmatpush3.bf16.msra.mxu1 %v1814_v15  ;;  %v289_v51 = vld [vmem:[%s3174_s1 + $0x860] sm:$0xff]  ;;  %v266_v53 = vld [vmem:[%s3174_s1 + $0x7a8] sm:$0xff]  ;;  %v308_v55 = vld [vmem:[%s3174_s1 + $0x8f8] sm:$0xff] }
  0x7e   :  { %1817 = vmatprep.subr.bf16.mxu1 %v1816_v18  ;;  %v249_v59 = vld [vmem:[%s3174_s1 + $0x720] sm:$0xff]  ;;  %v1910_v60 = vpack.c.bf16 %v290_v52, %v289_v51  ;;  %v1860_v1 = vpack.c.bf16 %v266_v53, %v265_v49  ;;  %v250_v62 = vld [vmem:[%s3174_s1 + $0x728] sm:$0xff]  ;;  %v1912_v32 = vpack.c.bf16 %v308_v55, %v307_v54  ;;  %v292_v0 = vld [vmem:[%s3174_s1 + $0x878] sm:$0xff]  ;;  %v440_v54 = vcombine.high %v2724_v25, %v2724_v25 }
  0x7f   :  { %1903 = vmatpush3.bf16.msra.mxu0 %v1902_v33  ;;  %v267_v2 = vld [vmem:[%s3174_s1 + $0x7b0] sm:$0xff]  ;;  %v268_v3 = vld [vmem:[%s3174_s1 + $0x7b8] sm:$0xff]  ;;  %v1862_v4 = vpack.c.bf16 %v250_v62, %v249_v59  ;;  %v341_v45 = vld [vmem:[%s3174_s1 + $0xa00] sm:$0xff] }
  0x80   :  { %1905 = vmatprep.subr.bf16.mxu0 %v1904_v61  ;;  %v251_v5 = vld [vmem:[%s3174_s1 + $0x730] sm:$0xff]  ;;  %v1864_v7 = vpack.c.bf16 %v268_v3, %v267_v2  ;;  %v252_v8 = vld [vmem:[%s3174_s1 + $0x738] sm:$0xff]  ;;  %v342_v9 = vld [vmem:[%s3174_s1 + $0xa08] sm:$0xff] }
  0x81   :  { %1819 = vmatpush3.bf16.msra.mxu1 %v1818_v29  ;;  %v269_v10 = vld [vmem:[%s3174_s1 + $0x7c0] sm:$0xff]  ;;  %v270_v11 = vld [vmem:[%s3174_s1 + $0x7c8] sm:$0xff]  ;;  %v1866_v13 = vpack.c.bf16 %v252_v8, %v251_v5  ;;  %v1949_v15 = vpack.c.bf16 %v342_v9, %v341_v45  ;;  %v343_v18 = vld [vmem:[%s3174_s1 + $0xa10] sm:$0xff] }
  0x82   :  { %1853 = vmatprep.subr.bf16.mxu1 %v1852_v34  ;;  %v2948_v12 = vld.sshfl [vmem:[%s3173_s0 + $0x28] sm:$0x33 pattern:$0x76325410]  ;;  %v253_v14 = vld [vmem:[%s3174_s1 + $0x740] sm:$0xff]  ;;  %v1868_v57 = vpack.c.bf16 %v270_v11, %v269_v10  ;;  %v344_v19 = vld [vmem:[%s3174_s1 + $0xa18] sm:$0xff] }
  0x83   :  { %1907 = vmatpush3.bf16.msra.mxu0 %v1906_v47  ;;  %v254_v16 = vld [vmem:[%s3174_s1 + $0x748] sm:$0xff]  ;;  %v271_v20 = vld [vmem:[%s3174_s1 + $0x7d0] sm:$0xff]  ;;  %v272_v21 = vld [vmem:[%s3174_s1 + $0x7d8] sm:$0xff]  ;;  %v464_v22 = vcombine.high %v2948_v12, %v2948_v12  ;;  %v1952_v27 = vpack.c.bf16 %v344_v19, %v343_v18 }
  0x84   :  { %904 = vmatmul.mubr.f32.vlgmr.msra.gmra.mrb[6].mxu1 %v2668_v63  ;;  %1909 = vmatprep.subr.bf16.mxu0 %v1908_v50  ;;  %v291_v63 = vld [vmem:[%s3174_s1 + $0x870] sm:$0xff]  ;;  %v1870_v23 = vpack.c.bf16 %v254_v16, %v253_v14  ;;  %v1872_v28 = vpack.c.bf16 %v272_v21, %v271_v20  ;;  %v256_v29 = vld [vmem:[%s3174_s1 + $0x758] sm:$0xff]  ;;  %v346_v30 = vld [vmem:[%s3174_s1 + $0xa28] sm:$0xff] }
  0x85   :  { %1855 = vmatpush3.bf16.msra.mxu1 %v1854_v43  ;;  %1043 = vmatprep.mubr.f32.mxu1 %v439_v56  ;;  %v1914_v6 = vpack.c.bf16 %v292_v0, %v291_v63  ;;  %v255_v26 = vld [vmem:[%s3174_s1 + $0x750] sm:$0xff]  ;;  %v273_v31 = vld [vmem:[%s3174_s1 + $0x7e0] sm:$0xff]  ;;  %v274_v33 = vld [vmem:[%s3174_s1 + $0x7e8] sm:$0xff]  ;;  %v3051_v63 = vrot.slane %v440_v54, %v2072_v24 }
  0x86   :  { %1857 = vmatprep.subr.bf16.mxu1 %v1856_v48  ;;  %v1874_v34 = vpack.c.bf16 %v256_v29, %v255_v26  ;;  %v257_v35 = vld [vmem:[%s3174_s1 + $0x760] sm:$0xff]  ;;  %v1876_v36 = vpack.c.bf16 %v274_v33, %v273_v31  ;;  %v258_v37 = vld [vmem:[%s3174_s1 + $0x768] sm:$0xff]  ;;  %v347_v38 = vld [vmem:[%s3174_s1 + $0xa30] sm:$0xff] }
  0x87   :  { %1911 = vmatpush3.bf16.msra.mxu0 %v1910_v60  ;;  %v348_v40 = vld [vmem:[%s3174_s1 + $0xa38] sm:$0xff]  ;;  %v275_v41 = vld [vmem:[%s3174_s1 + $0x7f0] sm:$0xff]  ;;  %v1878_v44 = vpack.c.bf16 %v258_v37, %v257_v35  ;;  %v349_v50 = vld [vmem:[%s3174_s1 + $0xa40] sm:$0xff]  ;;  %v456_v45 = vcombine.high %v3051_v63, %v3051_v63 }
  0x88   :  { %1913 = vmatprep.subr.bf16.mxu0 %v1912_v32  ;;  %v276_v43 = vld [vmem:[%s3174_s1 + $0x7f8] sm:$0xff]  ;;  %v259_v46 = vld [vmem:[%s3174_s1 + $0x770] sm:$0xff]  ;;  %v1958_v47 = vpack.c.bf16 %v348_v40, %v347_v38  ;;  %v350_v51 = vld [vmem:[%s3174_s1 + $0xa48] sm:$0xff] }
  0x89   :  { %1859 = vmatpush3.bf16.msra.mxu1 %v1858_v58  ;;  %v1880_v48 = vpack.c.bf16 %v276_v43, %v275_v41  ;;  %v260_v49 = vld [vmem:[%s3174_s1 + $0x778] sm:$0xff]  ;;  %v325_v52 = vld [vmem:[%s3174_s1 + $0x980] sm:$0xff]  ;;  %v326_v53 = vld [vmem:[%s3174_s1 + $0x988] sm:$0xff]  ;;  %v1961_v58 = vpack.c.bf16 %v350_v51, %v349_v50 }
  0x8a   :  { %1861 = vmatprep.subr.bf16.mxu1 %v1860_v1  ;;  %v1882_v55 = vpack.c.bf16 %v260_v49, %v259_v46  ;;  %v309_v56 = vld [vmem:[%s3174_s1 + $0x900] sm:$0xff]  ;;  %v1916_v59 = vpack.c.bf16 %v326_v53, %v325_v52  ;;  %v310_v60 = vld [vmem:[%s3174_s1 + $0x908] sm:$0xff]  ;;  %v351_v25 = vld [vmem:[%s3174_s1 + $0xa50] sm:$0xff] }
  0x8b   :  { %1915 = vmatpush3.bf16.msra.mxu0 %v1914_v6  ;;  %v352_v1 = vld [vmem:[%s3174_s1 + $0xa58] sm:$0xff]  ;;  %v327_v62 = vld [vmem:[%s3174_s1 + $0x990] sm:$0xff]  ;;  %v1918_v0 = vpack.c.bf16 %v310_v60, %v309_v56  ;;  %v353_v24 = vld [vmem:[%s3174_s1 + $0xa60] sm:$0xff] }
  0x8c   :  { %1948 = vmatprep.subr.bf16.mxu0 %v2008_v17  ;;  %v328_v32 = vld [vmem:[%s3174_s1 + $0x998] sm:$0xff]  ;;  %v311_v2 = vld [vmem:[%s3174_s1 + $0x910] sm:$0xff]  ;;  %v1964_v3 = vpack.c.bf16 %v352_v1, %v351_v25  ;;  %v354_v6 = vld [vmem:[%s3174_s1 + $0xa68] sm:$0xff] }
  0x8d   :  { %1863 = vmatpush3.bf16.msra.mxu1 %v1862_v4  ;;  %v1920_v4 = vpack.c.bf16 %v328_v32, %v327_v62  ;;  %v312_v5 = vld [vmem:[%s3174_s1 + $0x918] sm:$0xff]  ;;  %v330_v8 = vld [vmem:[%s3174_s1 + $0x9a8] sm:$0xff]  ;;  %v313_v10 = vld [vmem:[%s3174_s1 + $0x920] sm:$0xff]  ;;  %v1967_v11 = vpack.c.bf16 %v354_v6, %v353_v24 }
  0x8e   :  { %1865 = vmatprep.subr.bf16.mxu1 %v1864_v7  ;;  %1114 = vmatmul.mubr.f32.vlgmr.msra.gmra.mrb[6].mxu0 %v2752_v39  ;;  %v345_v39 = vld [vmem:[%s3174_s1 + $0xa20] sm:$0xff]  ;;  %v1922_v9 = vpack.c.bf16 %v312_v5, %v311_v2  ;;  %v314_v14 = vld [vmem:[%s3174_s1 + $0x928] sm:$0xff]  ;;  %v332_v16 = vld [vmem:[%s3174_s1 + $0x9b8] sm:$0xff] }
  0x8f   :  { %1950 = vmatpush1.bf16.msra.mxu0 %v1949_v15  ;;  %1277 = vmatprep.mubr.msk.f32.mxu0 %vm486_vm0, %v464_v22  ;;  %v1955_v61 = vpack.c.bf16 %v346_v30, %v345_v39  ;;  %v329_v7 = vld [vmem:[%s3174_s1 + $0x9a0] sm:$0xff]  ;;  %v356_v15 = vld [vmem:[%s3174_s1 + $0xa78] sm:$0xff]  ;;  %v1926_v18 = vpack.c.bf16 %v314_v14, %v313_v10  ;;  %v315_v19 = vld [vmem:[%s3174_s1 + $0x930] sm:$0xff] }
  0x90   :  { %1951 = vmatprep.subr.bf16.mxu0 %v2008_v17  ;;  %v316_v22 = vld [vmem:[%s3174_s1 + $0x938] sm:$0xff]  ;;  %v358_v26 = vld [vmem:[%s3174_s1 + $0xa88] sm:$0xff]  ;;  %v317_v31 = vld [vmem:[%s3174_s1 + $0x940] sm:$0xff] }
  0x91   :  { %1867 = vmatpush3.bf16.msra.mxu1 %v1866_v13  ;;  %v1924_v13 = vpack.c.bf16 %v330_v8, %v329_v7  ;;  %v1930_v29 = vpack.c.bf16 %v316_v22, %v315_v19  ;;  %v318_v33 = vld [vmem:[%s3174_s1 + $0x948] sm:$0xff]  ;;  %v336_v35 = vld [vmem:[%s3174_s1 + $0x9d8] sm:$0xff]  ;;  %v319_v37 = vld [vmem:[%s3174_s1 + $0x950] sm:$0xff] }
  0x92   :  { %1869 = vmatprep.subr.bf16.mxu1 %v1868_v57  ;;  %v331_v57 = vld [vmem:[%s3174_s1 + $0x9b0] sm:$0xff]  ;;  %v337_v38 = vld [vmem:[%s3174_s1 + $0x9e0] sm:$0xff]  ;;  %v338_v40 = vld [vmem:[%s3174_s1 + $0x9e8] sm:$0xff] }
  0x93   :  { %1953 = vmatpush1.bf16.msra.mxu0 %v1952_v27  ;;  %v1928_v21 = vpack.c.bf16 %v332_v16, %v331_v57  ;;  %v333_v27 = vld [vmem:[%s3174_s1 + $0x9c0] sm:$0xff]  ;;  %v1940_v43 = vpack.c.bf16 %v338_v40, %v337_v38  ;;  %v322_v46 = vld [vmem:[%s3174_s1 + $0x968] sm:$0xff]  ;;  %v323_v50 = vld [vmem:[%s3174_s1 + $0x970] sm:$0xff] }
  0x94   :  { %1954 = vmatprep.subr.bf16.mxu0 %v2008_v17  ;;  %v324_v51 = vld [vmem:[%s3174_s1 + $0x978] sm:$0xff]  ;;  %v1275_v60 = vld [vmem:[%s3175_s2] ss:$0 sm:$0xff] }
  0x95   :  { %1871 = vmatpush3.bf16.msra.mxu1 %v1870_v23  ;;  %v357_v23 = vld [vmem:[%s3174_s1 + $0xa80] sm:$0xff]  ;;  %v1946_v52 = vpack.c.bf16 %v324_v51, %v323_v50 }
  0x96   :  { %1873 = vmatprep.subr.bf16.mxu1 %v1872_v28  ;;  %v334_v28 = vld [vmem:[%s3174_s1 + $0x9c8] sm:$0xff]  ;;  %v1973_v39 = vpack.c.bf16 %v358_v26, %v357_v23 }
  0x97   :  { %1956 = vmatpush1.bf16.msra.mxu0 %v1955_v61  ;;  %v1932_v30 = vpack.c.bf16 %v334_v28, %v333_v27  ;;  %v1934_v61 = vpack.c.bf16 %v318_v33, %v317_v31 }
  0x98   :  { %1957 = vmatprep.subr.bf16.mxu0 %v2008_v17 }
  0x99   :  { %1875 = vmatpush3.bf16.msra.mxu1 %v1874_v34  ;;  %v335_v34 = vld [vmem:[%s3174_s1 + $0x9d0] sm:$0xff] }
  0x9a   :  { %1877 = vmatprep.subr.bf16.mxu1 %v1876_v36  ;;  %v1936_v36 = vpack.c.bf16 %v336_v35, %v335_v34 }
  0x9b   :  { %1959 = vmatpush1.bf16.msra.mxu0 %v1958_v47  ;;  %v339_v47 = vld [vmem:[%s3174_s1 + $0x9f0] sm:$0xff] }
  0x9c   :  { %1960 = vmatprep.subr.bf16.mxu0 %v2008_v17 }
  0x9d   :  { %1879 = vmatpush3.bf16.msra.mxu1 %v1878_v44  ;;  %v321_v44 = vld [vmem:[%s3174_s1 + $0x960] sm:$0xff] }
  0x9e   :  { %1881 = vmatprep.subr.bf16.mxu1 %v1880_v48  ;;  %v1942_v48 = vpack.c.bf16 %v322_v46, %v321_v44 }
  0x9f   :  { %1962 = vmatpush1.bf16.msra.mxu0 %v1961_v58 }
  0xa0   :  { %1963 = vmatprep.subr.bf16.mxu0 %v2008_v17 }
  0xa1   :  { %1883 = vmatpush3.bf16.msra.mxu1 %v1882_v55 }
  0xa2   :  { %1917 = vmatprep.subr.bf16.mxu1 %v1916_v59 }
  0xa3   :  { %1965 = vmatpush1.bf16.msra.mxu0 %v1964_v3 }
  0xa4   :  { %1044 = vmatmul.mubr.f32.vlgmr.msra.gmra.mrb[8].mxu1 %v2880_v42  ;;  %1966 = vmatprep.subr.bf16.mxu0 %v2008_v17  ;;  %v355_v42 = vld [vmem:[%s3174_s1 + $0xa70] sm:$0xff] }
  0xa5   :  { %1919 = vmatpush3.bf16.msra.mxu1 %v1918_v0  ;;  %1183 = vmatprep.mubr.f32.mxu1 %v456_v45  ;;  %v1970_v20 = vpack.c.bf16 %v356_v15, %v355_v42 }
  0xa6   :  { %1921 = vmatprep.subr.bf16.mxu1 %v1920_v4 }
  0xa7   :  { %1968 = vmatpush1.bf16.msra.mxu0 %v1967_v11 }
  0xa8   :  { %1969 = vmatprep.subr.bf16.mxu0 %v2008_v17 }
  0xa9   :  { %1923 = vmatpush3.bf16.msra.mxu1 %v1922_v9 }
  0xaa   :  { %1925 = vmatprep.subr.bf16.mxu1 %v1924_v13 }
  0xab   :  { %1971 = vmatpush1.bf16.msra.mxu0 %v1970_v20 }
  0xac   :  { %1972 = vmatprep.subr.bf16.mxu0 %v2008_v17  ;;  %v320_v17 = vld [vmem:[%s3174_s1 + $0x958] sm:$0xff] }
  0xad   :  { %1927 = vmatpush3.bf16.msra.mxu1 %v1926_v18  ;;  %v1938_v41 = vpack.c.bf16 %v320_v17, %v319_v37 }
  0xae   :  { %1929 = vmatprep.subr.bf16.mxu1 %v1928_v21 }
  0xaf   :  { %1974 = vmatpush1.bf16.msra.mxu0 %v1973_v39 }
  0xb1   :  { %1931 = vmatpush3.bf16.msra.mxu1 %v1930_v29 }
  0xb2   :  { %1933 = vmatprep.subr.bf16.mxu1 %v1932_v30  ;;  %1254 = vmatmul.mubr.f32.vlgmr.msra.gmra.mrb[8].mxu0 %v2948_v12  ;;  %v340_v12 = vld [vmem:[%s3174_s1 + $0x9f8] sm:$0xff]  ;;  %s2009_s1 = smov [#allocation2]  }
  0xb3   :  { %v1944_v49 = vpack.c.bf16 %v340_v12, %v339_v47  ;;  %s1267_s2 = sshll.u32 %s2009_s1, 4  ;;  %s1268_s2 = int_to_ptr.vmem [resolvable:$true] %s1267_s2 }
  0xb4   :  { %s1983_s22 = scalar_lea.vmem %s1268_s2, 32  ;;  %p1988_p1 = scmp.lt.s32.totalorder %s1268_s2, %s1268_s2 }
  0xb5   :  { %1935 = vmatpush3.bf16.msra.mxu1 %v1934_v61  ;;  %p1984_p0 = scmp.ne.s32.totalorder %s1268_s2, %s1983_s22  ;;  %p1989_p2 = scmp.lt.s32.totalorder %s1983_s22, %s1983_s22 }
  0xb6   :  { %1937 = vmatprep.subr.bf16.mxu1 %v1936_v36 }
  0xb7   :  { %p1990_p3 = por %p1989_p2, %p1988_p1 }
  0xb9   :  { %1939 = vmatpush3.bf16.msra.mxu1 %v1938_v41  ;;  %p1991_p4 = pnand %p1990_p3, %p1984_p0 }
  0xba   :  { %1941 = vmatprep.subr.bf16.mxu1 %v1940_v43 }
  0xbd   :  { %1943 = vmatpush3.bf16.msra.mxu1 %v1942_v48 }
  0xbe   :  { %1945 = vmatprep.subr.bf16.mxu1 %v1944_v49 }
  0xc1   :  { %1947 = vmatpush3.bf16.msra.mxu1 %v1946_v52 }
  0xc4   :  { %1184 = vmatmul.mubr.f32.vlgmr.msra.gmra.mrb[10].mxu1 %v3051_v63 }
  0xf7   :  { %v1310_v53 = vpop.f32.mrb[0].mxu1 }
  0xf8   :  { %v1311_v54 = vpop.f32.mrb[1].mxu1 }
  0xf9   :  { %v1312_v55 = vadd.f32 %v1311_v54, %v1310_v53 }
  0xfb   :  { %v556_v62 = vadd.f32 %v1312_v55, %v1275_v60 }
 0x100   :  { %v1380_v56 = vpop.f32.mrb[0].mxu0 }
 0x101   :  { %v1381_v58 = vpop.f32.mrb[1].mxu0 }
 0x102   :  { %v1382_v59 = vadd.f32 %v1381_v58, %v1380_v56 }
 0x117   :  { %v1345_v25 = vpop.f32.mrb[2].mxu1 }
 0x118   :  { %v1346_v1 = vpop.f32.mrb[3].mxu1 }
 0x119   :  { %v1347_v32 = vadd.f32 %v1346_v1, %v1345_v25 }
 0x11b   :  { %v626_v0 = vadd.f32 %v1347_v32, %v556_v62 }
 0x11d   :  { %v696_v2 = vadd.f32 %v1382_v59, %v626_v0 }
 0x120   :  { %v1450_v3 = vpop.f32.mrb[2].mxu0 }
 0x121   :  { %v1451_v4 = vpop.f32.mrb[3].mxu0 }
 0x122   :  { %v1452_v5 = vadd.f32 %v1451_v4, %v1450_v3 }
 0x137   :  { %v1415_v63 = vpop.f32.mrb[4].mxu1 }
 0x138   :  { %v1416_v24 = vpop.f32.mrb[5].mxu1 }
 0x139   :  { %v1417_v6 = vadd.f32 %v1416_v24, %v1415_v63 }
 0x13b   :  { %v766_v7 = vadd.f32 %v1417_v6, %v696_v2 }
 0x13d   :  { %v836_v8 = vadd.f32 %v1452_v5, %v766_v7 }
 0x140   :  { %v1520_v45 = vpop.f32.mrb[4].mxu0 }
 0x141   :  { %v1521_v9 = vpop.f32.mrb[5].mxu0 }
 0x142   :  { %v1522_v10 = vadd.f32 %v1521_v9, %v1520_v45 }
 0x157   :  { %v1485_v11 = vpop.f32.mrb[6].mxu1 }
 0x158   :  { %v1486_v13 = vpop.f32.mrb[7].mxu1 }
 0x159   :  { %v1487_v14 = vadd.f32 %v1486_v13, %v1485_v11 }
 0x15b   :  { %v906_v42 = vadd.f32 %v1487_v14, %v836_v8 }
 0x15d   :  { %v976_v15 = vadd.f32 %v1522_v10, %v906_v42 }
 0x161   :  { %v1590_v57 = vpop.f32.mrb[6].mxu0 }
 0x162   :  { %v1591_v16 = vpop.f32.mrb[7].mxu0 }
 0x163   :  { %v1592_v18 = vadd.f32 %v1591_v16, %v1590_v57 }
 0x177   :  { %v1555_v19 = vpop.f32.mrb[8].mxu1 }
 0x178   :  { %v1556_v20 = vpop.f32.mrb[9].mxu1 }
 0x179   :  { %v1557_v21 = vadd.f32 %v1556_v20, %v1555_v19 }
 0x17b   :  { %v1046_v22 = vadd.f32 %v1557_v21, %v976_v15 }
 0x17d   :  { %v1116_v23 = vadd.f32 %v1592_v18, %v1046_v22 }
 0x185   :  { %v1255_v26 = vpop.f32.mrb[8].mxu0 }
 0x186   :  { %v1257_v27 = vpop.f32.mrb[9].mxu0 }
 0x197   :  { %v1625_v28 = vpop.f32.mrb[10].mxu1 }
 0x198   :  { %v1626_v29 = vpop.f32.mrb[11].mxu1 }
 0x199   :  { %v1627_v39 = vadd.f32 %v1626_v29, %v1625_v28 }
 0x19b   :  { %v1186_v30 = vadd.f32 %v1627_v39, %v1116_v23 }
 0x19d   :  { %v1256_v31 = vadd.f32 %v1255_v26, %v1186_v30 }
 0x19f   :  { %1260 = vst.msk [vmem:[#allocation2] sm:$0x3] %vm1259_vm1, %v1256_v31 }
 0x1a0   :  { %1994 = shalt.err (!%p1991_p4)
}
 0x1a1   :  { %s1995_s25 = scalar_lea.hbm %s3176_s3, 32 }
 0x1a2   :  { %p1996_p5 = scmp.ne.s32.totalorder %s3176_s3, %s1995_s25  ;;  %p1999_p6 = scmp.lt.u32.totalorder %s1995_s25, %s3176_s3 }
 0x1a4   :  { %p2001_p7 = pnand %p1999_p6, %p1996_p5 }
 0x1a6   :  { %2004 = shalt.err (!%p2001_p7)
}
 0x1a7   :  { %1270 = dma.vmem_to_hbm [thread:$0]  %s1268_s2, 32, %s3176_s3, [#allocation3]  }
 0x1a8   :  { %2005 = dma.done.wait [#allocation3], 32  }
 0x1a9   :  { %2006 = vsyncadd [#allocation3], 4294967264 }
 0x1aa   :  { %1274 = vsyncpa [#allocation3], 1 }

</bundles_post_ra>
